<compile_context>
chip_gen: v7x
topology: tpu7x:2x2x1
jax: 0.10.0
libtpu: 0.0.40
codegen_flags: <defaults>
</compile_context>

<pallas_src>
import functools

import jax
import jax.numpy as jnp
from jax.experimental import pallas as pl
from jax.experimental.pallas import tpu as pltpu

EPS = 1e-5  # PyTorch nn.LayerNorm default eps


# ----------------------------------------------------------------------------- helpers
def _round_up(n, m):
    return ((n + m - 1) // m) * m


def _pick_tm(batch, tm_max=256):
    """Row-tile size: multiple of 8, <= tm_max, and >=2 grid steps when possible."""
    bp8 = _round_up(max(batch, 1), 8)
    tm = min(tm_max, bp8)
    if tm == bp8 and bp8 >= 16:
        # single-step grid but splittable: split so v7x's 2nd TensorCore gets work
        tm = _round_up(pl.cdiv(bp8, 2), 8)
    return max(8, tm)


def _vmem_limit(buf_bytes):
    """Scoped-VMEM request from the actual buffer footprint, clamped to the chip."""
    want = int(buf_bytes) + (2 << 20)          # headroom for internal scratch
    try:
        cap = int(pltpu.get_tpu_info().vmem_capacity_bytes)
    except Exception:                          # pragma: no cover - conservative default
        cap = 64 << 20                         # v7x per-TC capacity
    return max(min(want, cap - (1 << 20)), 16 << 20)


def _const_index_map(ndim):
    zeros = (0,) * ndim
    return lambda i: zeros


def _const_spec(shape):
    """Constant-index (resident) block; single-buffered when supported."""
    imap = _const_index_map(len(shape))
    try:
        return pl.BlockSpec(shape, imap, pipeline_mode=pl.Buffered(1))
    except TypeError:  # older jax without pipeline_mode kwarg
        return pl.BlockSpec(shape, imap)


def _layernorm(v, g, b):
    # two-pass (centered) variance in f32: robust against large residual means
    mu = jnp.mean(v, axis=-1, keepdims=True)
    c = v - mu
    var = jnp.mean(c * c, axis=-1, keepdims=True)
    return c * jax.lax.rsqrt(var + EPS) * g + b


# ----------------------------------------------------------------------------- fused kernel
def _fused_kernel(x_ref, w_in_ref, b_in_ref,
                  blk_vec_ref, w1_ref, w2_ref,
                  norm_vec_ref, w_head_ref, b_head_ref,
                  o_ref, *, num_layers, mxu_dtype):
    f32 = jnp.float32

    # input projection (single cast of the input tile to the MXU dtype)
    h = jnp.dot(x_ref[...].astype(mxu_dtype), w_in_ref[...],
                preferred_element_type=f32) + b_in_ref[...]

    # residual blocks: LN -> Linear -> ReLU -> LN -> Linear -> +identity
    for l in range(num_layers):
        vecs = blk_vec_ref[l]                       # (6, D) f32: g1,be1,b1,g2,be2,b2
        g1, be1, b1 = vecs[0:1], vecs[1:2], vecs[2:3]
        g2, be2, b2 = vecs[3:4], vecs[4:5], vecs[5:6]

        t = _layernorm(h, g1, be1)
        t = jnp.dot(t.astype(mxu_dtype), w1_ref[l],
                    preferred_element_type=f32) + b1
        t = jnp.maximum(t, 0.0)
        t = _layernorm(t, g2, be2)
        t = jnp.dot(t.astype(mxu_dtype), w2_ref[l],
                    preferred_element_type=f32) + b2
        h = h + t

    # final LN -> ReLU -> fused [p_head | q_head] matmul
    nv = norm_vec_ref[...]                          # (2, D)
    t = jnp.maximum(_layernorm(h, nv[0:1], nv[1:2]), 0.0)
    o_ref[...] = (jnp.dot(t.astype(mxu_dtype), w_head_ref[...],
                          preferred_element_type=f32)
                  + b_head_ref[...]).astype(o_ref.dtype)


# ----------------------------------------------------------------------------- wrapper
def prepare_params(params, *, mxu_dtype=None):
    """One-time prep: transpose weights to (in, out), stack per-block tensors,
    concat the two heads. Run once at load; NOT per forward."""
    wdt = mxu_dtype or jnp.float32
    f32 = jnp.float32
    blocks = params["blocks"]
    return {
        "w_in": jnp.asarray(params["in_proj"]["w"]).T.astype(wdt),        # (Din, D)
        "b_in": jnp.asarray(params["in_proj"]["b"]).reshape(1, -1).astype(f32),
        "blk_vec": jnp.stack([                                            # (L, 6, D)
            jnp.stack([b["g1"], b["be1"], b["b1"], b["g2"], b["be2"], b["b2"]])
            for b in blocks]).astype(f32),
        "w1": jnp.stack([b["w1"].T for b in blocks]).astype(wdt),         # (L, D, D)
        "w2": jnp.stack([b["w2"].T for b in blocks]).astype(wdt),         # (L, D, D)
        "norm_vec": jnp.stack([params["norm"]["g"],
                               params["norm"]["be"]]).astype(f32),        # (2, D)
        "w_head": jnp.concatenate([params["p_head"]["w"].T,
                                   params["q_head"]["w"].T], axis=1).astype(wdt),  # (D, 2*Dout)
        "b_head": jnp.concatenate([params["p_head"]["b"],
                                   params["q_head"]["b"]]).reshape(1, -1).astype(f32),
    }


def prime_factor_mlp(x, prep, *, tm_max=256):
    """Full fused PrimeFactorMLP forward. x: [B, input_dim] float32. Returns (p, q)."""
    B, Din = x.shape
    L, D, _ = prep["w1"].shape
    Dout2 = prep["w_head"].shape[1]
    mxu_dtype = prep["w_in"].dtype

    tm = _pick_tm(B, tm_max)
    Bp = _round_up(B, tm)
    xp = jnp.pad(x, ((0, Bp - B), (0, 0))) if Bp != B else x   # pad ONCE

    # VMEM accounting: row tiles double-buffered, resident weights single-buffered
    witem = jnp.dtype(mxu_dtype).itemsize
    row_bytes = 2 * (tm * Din * 4 + tm * Dout2 * 4)
    wt_bytes = (Din * D + 2 * L * D * D + D * Dout2) * witem
    vec_bytes = (D + L * 6 * D + 2 * D + Dout2) * 4
    vmem = _vmem_limit(row_bytes + wt_bytes + vec_bytes)

    cost = pl.CostEstimate(
        flops=2 * Bp * (Din * D + 2 * L * D * D + D * Dout2) + 14 * Bp * D * (L + 1),
        transcendentals=Bp * (2 * L + 1),
        bytes_accessed=Bp * (Din + Dout2) * 4 + wt_bytes + vec_bytes,
    )

    kernel = functools.partial(_fused_kernel, num_layers=L, mxu_dtype=mxu_dtype)

    out = pl.pallas_call(
        kernel,
        out_shape=jax.ShapeDtypeStruct((Bp, Dout2), jnp.float32),
        grid_spec=pltpu.PrefetchScalarGridSpec(
            num_scalar_prefetch=0,
            grid=(Bp // tm,),
            in_specs=[
                pl.BlockSpec((tm, Din), lambda i: (i, 0)),   # streamed row tile
                _const_spec((Din, D)),                       # in_proj weight (resident)
                _const_spec((1, D)),                         # in_proj bias
                _const_spec((L, 6, D)),                      # per-block LN/bias vectors
                _const_spec((L, D, D)),                      # block linear1 weights
                _const_spec((L, D, D)),                      # block linear2 weights
                _const_spec((2, D)),                         # final norm gamma/beta
                _const_spec((D, Dout2)),                     # [p_head | q_head] weight
                _const_spec((1, Dout2)),                     # [p_head | q_head] bias
            ],
            out_specs=pl.BlockSpec((tm, Dout2), lambda i: (i, 0)),
        ),
        compiler_params=pltpu.CompilerParams(
            dimension_semantics=("parallel",), vmem_limit_bytes=vmem),
        cost_estimate=cost,
    )(xp, prep["w_in"], prep["b_in"], prep["blk_vec"], prep["w1"], prep["w2"],
      prep["norm_vec"], prep["w_head"], prep["b_head"])

    out = out[:B]                     # slice ONCE
    Dout = Dout2 // 2
    return out[:, :Dout], out[:, Dout:]


# ----------------------------------------------------------------------------- params / reference
def _linear_init(key, fan_in, fan_out):
    kw, kb = jax.random.split(key)
    bound = fan_in ** -0.5
    return {
        "w": jax.random.uniform(kw, (fan_out, fan_in), jnp.float32, -bound, bound),
        "b": jax.random.uniform(kb, (fan_out,), jnp.float32, -bound, bound),
    }


def init_params(key, input_dim, hidden_dim, output_dim, num_layers):
    keys = jax.random.split(key, 3 + num_layers)
    blocks = []
    for li in range(num_layers):
        k1, k2 = jax.random.split(keys[3 + li])
        lin1 = _linear_init(k1, hidden_dim, hidden_dim)
        lin2 = _linear_init(k2, hidden_dim, hidden_dim)
        blocks.append({
            "g1": jnp.ones((hidden_dim,), jnp.float32),
            "be1": jnp.zeros((hidden_dim,), jnp.float32),
            "w1": lin1["w"], "b1": lin1["b"],
            "g2": jnp.ones((hidden_dim,), jnp.float32),
            "be2": jnp.zeros((hidden_dim,), jnp.float32),
            "w2": lin2["w"], "b2": lin2["b"],
        })
    return {
        "in_proj": _linear_init(keys[0], input_dim, hidden_dim),
        "blocks": blocks,
        "norm": {"g": jnp.ones((hidden_dim,), jnp.float32),
                 "be": jnp.zeros((hidden_dim,), jnp.float32)},
        "p_head": _linear_init(keys[1], hidden_dim, output_dim),
        "q_head": _linear_init(keys[2], hidden_dim, output_dim),
    }


def _ln_ref(v, g, b):
    mu = jnp.mean(v, axis=-1, keepdims=True)
    var = jnp.mean((v - mu) ** 2, axis=-1, keepdims=True)
    return (v - mu) * jax.lax.rsqrt(var + EPS) * g + b


def prime_factor_mlp_ref(x, params):
    h = x @ params["in_proj"]["w"].T + params["in_proj"]["b"]
    for blk in params["blocks"]:
        t = _ln_ref(h, blk["g1"], blk["be1"])
        t = jnp.maximum(t @ blk["w1"].T + blk["b1"], 0.0)
        t = _ln_ref(t, blk["g2"], blk["be2"])
        t = t @ blk["w2"].T + blk["b2"]
        h = t + h
    h = jnp.maximum(_ln_ref(h, params["norm"]["g"], params["norm"]["be"]), 0.0)
    p = h @ params["p_head"]["w"].T + params["p_head"]["b"]
    q = h @ params["q_head"]["w"].T + params["q_head"]["b"]
    return p, q


# ----------------------------------------------------------------------------- test
if __name__ == "__main__":
    key = jax.random.PRNGKey(0)
    kx, kp = jax.random.split(key)

    B, DIN, DH, DOUT, LAYERS = 4, 16, 32, 8, 3
    x = jax.random.normal(kx, (B, DIN), jnp.float32)
    params = init_params(kp, DIN, DH, DOUT, LAYERS)

    # one-time parameter prep (transpose / stack / concat); f32 weights so the
    # 1e-4 tolerance vs the f32 reference holds. Use mxu_dtype=jnp.bfloat16 in
    # production on v6e/v7x.
    prep = prepare_params(params)

    fwd = jax.jit(prime_factor_mlp)
    p_pred, q_pred = fwd(x, prep)
    p_pred, q_pred = jax.block_until_ready((p_pred, q_pred))

    p_ref, q_ref = prime_factor_mlp_ref(x, params)
    assert p_pred.shape == (B, DOUT) and q_pred.shape == (B, DOUT)
    assert p_pred.dtype == jnp.float32 and q_pred.dtype == jnp.float32
    assert jnp.allclose(p_pred, p_ref, atol=1e-4, rtol=1e-4), "p_head mismatch vs reference"
    assert jnp.allclose(q_pred, q_ref, atol=1e-4, rtol=1e-4), "q_head mismatch vs reference"

    print("KERNEL_OK")
</pallas_src>

<mosaic_0001>
module attributes {stable_mosaic.version = 11 : i64} {
  func.func @_fused_kernel(%arg0: i32, %arg1: memref<8x16xf32, #tpu.memory_space<vmem>>, %arg2: memref<16x32xf32, #tpu.memory_space<vmem>>, %arg3: memref<1x32xf32, #tpu.memory_space<vmem>>, %arg4: memref<3x6x32xf32, #tpu.memory_space<vmem>>, %arg5: memref<3x32x32xf32, #tpu.memory_space<vmem>>, %arg6: memref<3x32x32xf32, #tpu.memory_space<vmem>>, %arg7: memref<2x32xf32, #tpu.memory_space<vmem>>, %arg8: memref<32x16xf32, #tpu.memory_space<vmem>>, %arg9: memref<1x16xf32, #tpu.memory_space<vmem>>, %arg10: memref<8x16xf32, #tpu.memory_space<vmem>>) attributes {dimension_semantics = [#tpu.dimension_semantics<parallel>], iteration_bounds = array<i64: 1>, scalar_prefetch = 0 : i64, scratch_operands = 0 : i64, tpu.core_type = #tpu.core_type<tc>, window_params = [{transform_indices = @transform_0, window_bounds = array<i64: 8, 16>}, {pipeline_mode = #tpu.pipeline_mode<synchronous>, transform_indices = @transform_1, window_bounds = array<i64: 16, 32>}, {pipeline_mode = #tpu.pipeline_mode<synchronous>, transform_indices = @transform_2, window_bounds = array<i64: 1, 32>}, {pipeline_mode = #tpu.pipeline_mode<synchronous>, transform_indices = @transform_3, window_bounds = array<i64: 3, 6, 32>}, {pipeline_mode = #tpu.pipeline_mode<synchronous>, transform_indices = @transform_4, window_bounds = array<i64: 3, 32, 32>}, {pipeline_mode = #tpu.pipeline_mode<synchronous>, transform_indices = @transform_5, window_bounds = array<i64: 3, 32, 32>}, {pipeline_mode = #tpu.pipeline_mode<synchronous>, transform_indices = @transform_6, window_bounds = array<i64: 2, 32>}, {pipeline_mode = #tpu.pipeline_mode<synchronous>, transform_indices = @transform_7, window_bounds = array<i64: 32, 16>}, {pipeline_mode = #tpu.pipeline_mode<synchronous>, transform_indices = @transform_8, window_bounds = array<i64: 1, 16>}, {transform_indices = @transform_9, window_bounds = array<i64: 8, 16>}]} {
    %c0 = arith.constant 0 : index
    %c0_0 = arith.constant 0 : index
    %0 = vector.load %arg1[%c0, %c0_0] : memref<8x16xf32, #tpu.memory_space<vmem>>, vector<8x16xf32>
    %c0_1 = arith.constant 0 : index
    %c0_2 = arith.constant 0 : index
    %1 = vector.load %arg2[%c0_1, %c0_2] : memref<16x32xf32, #tpu.memory_space<vmem>>, vector<16x32xf32>
    %cst = arith.constant dense<0.000000e+00> : vector<8x32xf32>
    %2 = tpu.matmul %0, %1, %cst {dimension_numbers = #tpu.dot_dimension_numbers<[1], [0], [0], [1], [0, 0, 1, 1], [], []>} : vector<8x16xf32>, vector<16x32xf32>, vector<8x32xf32> -> vector<8x32xf32>
    %c0_3 = arith.constant 0 : index
    %c0_4 = arith.constant 0 : index
    %3 = vector.load %arg3[%c0_3, %c0_4] : memref<1x32xf32, #tpu.memory_space<vmem>>, vector<1x32xf32>
    %4 = vector.broadcast %3 : vector<1x32xf32> to vector<8x32xf32>
    %5 = arith.addf %2, %4 : vector<8x32xf32>
    %c0_5 = arith.constant 0 : index
    %c0_6 = arith.constant 0 : index
    %c0_7 = arith.constant 0 : index
    %6 = vector.load %arg4[%c0_5, %c0_6, %c0_7] : memref<3x6x32xf32, #tpu.memory_space<vmem>>, vector<1x6x32xf32>
    %7 = vector.shape_cast %6 : vector<1x6x32xf32> to vector<6x32xf32>
    %8 = vector.extract_strided_slice %7 {offsets = [0, 0], sizes = [1, 32], strides = [1, 1]} : vector<6x32xf32> to vector<1x32xf32>
    %9 = vector.extract_strided_slice %7 {offsets = [1, 0], sizes = [1, 32], strides = [1, 1]} : vector<6x32xf32> to vector<1x32xf32>
    %10 = vector.extract_strided_slice %7 {offsets = [2, 0], sizes = [1, 32], strides = [1, 1]} : vector<6x32xf32> to vector<1x32xf32>
    %11 = vector.extract_strided_slice %7 {offsets = [3, 0], sizes = [1, 32], strides = [1, 1]} : vector<6x32xf32> to vector<1x32xf32>
    %12 = vector.extract_strided_slice %7 {offsets = [4, 0], sizes = [1, 32], strides = [1, 1]} : vector<6x32xf32> to vector<1x32xf32>
    %13 = vector.extract_strided_slice %7 {offsets = [5, 0], sizes = [1, 32], strides = [1, 1]} : vector<6x32xf32> to vector<1x32xf32>
    %cst_8 = arith.constant dense<0.000000e+00> : vector<8xf32>
    %14 = vector.multi_reduction <add>, %5, %cst_8 [1] : vector<8x32xf32> to vector<8xf32>
    %15 = vector.shape_cast %14 : vector<8xf32> to vector<8x1xf32>
    %cst_9 = arith.constant 3.200000e+01 : f32
    %16 = vector.broadcast %cst_9 : f32 to vector<8x1xf32>
    %17 = arith.divf %15, %16 : vector<8x1xf32>
    %18 = vector.broadcast %17 : vector<8x1xf32> to vector<8x32xf32>
    %19 = arith.subf %5, %18 : vector<8x32xf32>
    %20 = arith.mulf %19, %19 : vector<8x32xf32>
    %cst_10 = arith.constant dense<0.000000e+00> : vector<8xf32>
    %21 = vector.multi_reduction <add>, %20, %cst_10 [1] : vector<8x32xf32> to vector<8xf32>
    %22 = vector.shape_cast %21 : vector<8xf32> to vector<8x1xf32>
    %cst_11 = arith.constant 3.200000e+01 : f32
    %23 = vector.broadcast %cst_11 : f32 to vector<8x1xf32>
    %24 = arith.divf %22, %23 : vector<8x1xf32>
    %cst_12 = arith.constant 9.99999974E-6 : f32
    %25 = vector.broadcast %cst_12 : f32 to vector<8x1xf32>
    %26 = arith.addf %24, %25 : vector<8x1xf32>
    %27 = math.rsqrt %26 : vector<8x1xf32>
    %28 = vector.broadcast %27 : vector<8x1xf32> to vector<8x32xf32>
    %29 = arith.mulf %19, %28 : vector<8x32xf32>
    %30 = vector.broadcast %8 : vector<1x32xf32> to vector<8x32xf32>
    %31 = arith.mulf %29, %30 : vector<8x32xf32>
    %32 = vector.broadcast %9 : vector<1x32xf32> to vector<8x32xf32>
    %33 = arith.addf %31, %32 : vector<8x32xf32>
    %c0_13 = arith.constant 0 : index
    %c0_14 = arith.constant 0 : index
    %c0_15 = arith.constant 0 : index
    %34 = vector.load %arg5[%c0_13, %c0_14, %c0_15] : memref<3x32x32xf32, #tpu.memory_space<vmem>>, vector<1x32x32xf32>
    %35 = vector.shape_cast %34 : vector<1x32x32xf32> to vector<32x32xf32>
    %cst_16 = arith.constant dense<0.000000e+00> : vector<8x32xf32>
    %36 = tpu.matmul %33, %35, %cst_16 {dimension_numbers = #tpu.dot_dimension_numbers<[1], [0], [0], [1], [0, 0, 1, 1], [], []>} : vector<8x32xf32>, vector<32x32xf32>, vector<8x32xf32> -> vector<8x32xf32>
    %37 = vector.broadcast %10 : vector<1x32xf32> to vector<8x32xf32>
    %38 = arith.addf %36, %37 : vector<8x32xf32>
    %cst_17 = arith.constant 0.000000e+00 : f32
    %39 = vector.broadcast %cst_17 : f32 to vector<8x32xf32>
    %40 = arith.maximumf %38, %39 : vector<8x32xf32>
    %cst_18 = arith.constant dense<0.000000e+00> : vector<8xf32>
    %41 = vector.multi_reduction <add>, %40, %cst_18 [1] : vector<8x32xf32> to vector<8xf32>
    %42 = vector.shape_cast %41 : vector<8xf32> to vector<8x1xf32>
    %cst_19 = arith.constant 3.200000e+01 : f32
    %43 = vector.broadcast %cst_19 : f32 to vector<8x1xf32>
    %44 = arith.divf %42, %43 : vector<8x1xf32>
    %45 = vector.broadcast %44 : vector<8x1xf32> to vector<8x32xf32>
    %46 = arith.subf %40, %45 : vector<8x32xf32>
    %47 = arith.mulf %46, %46 : vector<8x32xf32>
    %cst_20 = arith.constant dense<0.000000e+00> : vector<8xf32>
    %48 = vector.multi_reduction <add>, %47, %cst_20 [1] : vector<8x32xf32> to vector<8xf32>
    %49 = vector.shape_cast %48 : vector<8xf32> to vector<8x1xf32>
    %cst_21 = arith.constant 3.200000e+01 : f32
    %50 = vector.broadcast %cst_21 : f32 to vector<8x1xf32>
    %51 = arith.divf %49, %50 : vector<8x1xf32>
    %cst_22 = arith.constant 9.99999974E-6 : f32
    %52 = vector.broadcast %cst_22 : f32 to vector<8x1xf32>
    %53 = arith.addf %51, %52 : vector<8x1xf32>
    %54 = math.rsqrt %53 : vector<8x1xf32>
    %55 = vector.broadcast %54 : vector<8x1xf32> to vector<8x32xf32>
    %56 = arith.mulf %46, %55 : vector<8x32xf32>
    %57 = vector.broadcast %11 : vector<1x32xf32> to vector<8x32xf32>
    %58 = arith.mulf %56, %57 : vector<8x32xf32>
    %59 = vector.broadcast %12 : vector<1x32xf32> to vector<8x32xf32>
    %60 = arith.addf %58, %59 : vector<8x32xf32>
    %c0_23 = arith.constant 0 : index
    %c0_24 = arith.constant 0 : index
    %c0_25 = arith.constant 0 : index
    %61 = vector.load %arg6[%c0_23, %c0_24, %c0_25] : memref<3x32x32xf32, #tpu.memory_space<vmem>>, vector<1x32x32xf32>
    %62 = vector.shape_cast %61 : vector<1x32x32xf32> to vector<32x32xf32>
    %cst_26 = arith.constant dense<0.000000e+00> : vector<8x32xf32>
    %63 = tpu.matmul %60, %62, %cst_26 {dimension_numbers = #tpu.dot_dimension_numbers<[1], [0], [0], [1], [0, 0, 1, 1], [], []>} : vector<8x32xf32>, vector<32x32xf32>, vector<8x32xf32> -> vector<8x32xf32>
    %64 = vector.broadcast %13 : vector<1x32xf32> to vector<8x32xf32>
    %65 = arith.addf %63, %64 : vector<8x32xf32>
    %66 = arith.addf %5, %65 : vector<8x32xf32>
    %c1 = arith.constant 1 : index
    %c0_27 = arith.constant 0 : index
    %c0_28 = arith.constant 0 : index
    %67 = vector.load %arg4[%c1, %c0_27, %c0_28] : memref<3x6x32xf32, #tpu.memory_space<vmem>>, vector<1x6x32xf32>
    %68 = vector.shape_cast %67 : vector<1x6x32xf32> to vector<6x32xf32>
    %69 = vector.extract_strided_slice %68 {offsets = [0, 0], sizes = [1, 32], strides = [1, 1]} : vector<6x32xf32> to vector<1x32xf32>
    %70 = vector.extract_strided_slice %68 {offsets = [1, 0], sizes = [1, 32], strides = [1, 1]} : vector<6x32xf32> to vector<1x32xf32>
    %71 = vector.extract_strided_slice %68 {offsets = [2, 0], sizes = [1, 32], strides = [1, 1]} : vector<6x32xf32> to vector<1x32xf32>
    %72 = vector.extract_strided_slice %68 {offsets = [3, 0], sizes = [1, 32], strides = [1, 1]} : vector<6x32xf32> to vector<1x32xf32>
    %73 = vector.extract_strided_slice %68 {offsets = [4, 0], sizes = [1, 32], strides = [1, 1]} : vector<6x32xf32> to vector<1x32xf32>
    %74 = vector.extract_strided_slice %68 {offsets = [5, 0], sizes = [1, 32], strides = [1, 1]} : vector<6x32xf32> to vector<1x32xf32>
    %cst_29 = arith.constant dense<0.000000e+00> : vector<8xf32>
    %75 = vector.multi_reduction <add>, %66, %cst_29 [1] : vector<8x32xf32> to vector<8xf32>
    %76 = vector.shape_cast %75 : vector<8xf32> to vector<8x1xf32>
    %cst_30 = arith.constant 3.200000e+01 : f32
    %77 = vector.broadcast %cst_30 : f32 to vector<8x1xf32>
    %78 = arith.divf %76, %77 : vector<8x1xf32>
    %79 = vector.broadcast %78 : vector<8x1xf32> to vector<8x32xf32>
    %80 = arith.subf %66, %79 : vector<8x32xf32>
    %81 = arith.mulf %80, %80 : vector<8x32xf32>
    %cst_31 = arith.constant dense<0.000000e+00> : vector<8xf32>
    %82 = vector.multi_reduction <add>, %81, %cst_31 [1] : vector<8x32xf32> to vector<8xf32>
    %83 = vector.shape_cast %82 : vector<8xf32> to vector<8x1xf32>
    %cst_32 = arith.constant 3.200000e+01 : f32
    %84 = vector.broadcast %cst_32 : f32 to vector<8x1xf32>
    %85 = arith.divf %83, %84 : vector<8x1xf32>
    %cst_33 = arith.constant 9.99999974E-6 : f32
    %86 = vector.broadcast %cst_33 : f32 to vector<8x1xf32>
    %87 = arith.addf %85, %86 : vector<8x1xf32>
    %88 = math.rsqrt %87 : vector<8x1xf32>
    %89 = vector.broadcast %88 : vector<8x1xf32> to vector<8x32xf32>
    %90 = arith.mulf %80, %89 : vector<8x32xf32>
    %91 = vector.broadcast %69 : vector<1x32xf32> to vector<8x32xf32>
    %92 = arith.mulf %90, %91 : vector<8x32xf32>
    %93 = vector.broadcast %70 : vector<1x32xf32> to vector<8x32xf32>
    %94 = arith.addf %92, %93 : vector<8x32xf32>
    %c1_34 = arith.constant 1 : index
    %c0_35 = arith.constant 0 : index
    %c0_36 = arith.constant 0 : index
    %95 = vector.load %arg5[%c1_34, %c0_35, %c0_36] : memref<3x32x32xf32, #tpu.memory_space<vmem>>, vector<1x32x32xf32>
    %96 = vector.shape_cast %95 : vector<1x32x32xf32> to vector<32x32xf32>
    %cst_37 = arith.constant dense<0.000000e+00> : vector<8x32xf32>
    %97 = tpu.matmul %94, %96, %cst_37 {dimension_numbers = #tpu.dot_dimension_numbers<[1], [0], [0], [1], [0, 0, 1, 1], [], []>} : vector<8x32xf32>, vector<32x32xf32>, vector<8x32xf32> -> vector<8x32xf32>
    %98 = vector.broadcast %71 : vector<1x32xf32> to vector<8x32xf32>
    %99 = arith.addf %97, %98 : vector<8x32xf32>
    %cst_38 = arith.constant 0.000000e+00 : f32
    %100 = vector.broadcast %cst_38 : f32 to vector<8x32xf32>
    %101 = arith.maximumf %99, %100 : vector<8x32xf32>
    %cst_39 = arith.constant dense<0.000000e+00> : vector<8xf32>
    %102 = vector.multi_reduction <add>, %101, %cst_39 [1] : vector<8x32xf32> to vector<8xf32>
    %103 = vector.shape_cast %102 : vector<8xf32> to vector<8x1xf32>
    %cst_40 = arith.constant 3.200000e+01 : f32
    %104 = vector.broadcast %cst_40 : f32 to vector<8x1xf32>
    %105 = arith.divf %103, %104 : vector<8x1xf32>
    %106 = vector.broadcast %105 : vector<8x1xf32> to vector<8x32xf32>
    %107 = arith.subf %101, %106 : vector<8x32xf32>
    %108 = arith.mulf %107, %107 : vector<8x32xf32>
    %cst_41 = arith.constant dense<0.000000e+00> : vector<8xf32>
    %109 = vector.multi_reduction <add>, %108, %cst_41 [1] : vector<8x32xf32> to vector<8xf32>
    %110 = vector.shape_cast %109 : vector<8xf32> to vector<8x1xf32>
    %cst_42 = arith.constant 3.200000e+01 : f32
    %111 = vector.broadcast %cst_42 : f32 to vector<8x1xf32>
    %112 = arith.divf %110, %111 : vector<8x1xf32>
    %cst_43 = arith.constant 9.99999974E-6 : f32
    %113 = vector.broadcast %cst_43 : f32 to vector<8x1xf32>
    %114 = arith.addf %112, %113 : vector<8x1xf32>
    %115 = math.rsqrt %114 : vector<8x1xf32>
    %116 = vector.broadcast %115 : vector<8x1xf32> to vector<8x32xf32>
    %117 = arith.mulf %107, %116 : vector<8x32xf32>
    %118 = vector.broadcast %72 : vector<1x32xf32> to vector<8x32xf32>
    %119 = arith.mulf %117, %118 : vector<8x32xf32>
    %120 = vector.broadcast %73 : vector<1x32xf32> to vector<8x32xf32>
    %121 = arith.addf %119, %120 : vector<8x32xf32>
    %c1_44 = arith.constant 1 : index
    %c0_45 = arith.constant 0 : index
    %c0_46 = arith.constant 0 : index
    %122 = vector.load %arg6[%c1_44, %c0_45, %c0_46] : memref<3x32x32xf32, #tpu.memory_space<vmem>>, vector<1x32x32xf32>
    %123 = vector.shape_cast %122 : vector<1x32x32xf32> to vector<32x32xf32>
    %cst_47 = arith.constant dense<0.000000e+00> : vector<8x32xf32>
    %124 = tpu.matmul %121, %123, %cst_47 {dimension_numbers = #tpu.dot_dimension_numbers<[1], [0], [0], [1], [0, 0, 1, 1], [], []>} : vector<8x32xf32>, vector<32x32xf32>, vector<8x32xf32> -> vector<8x32xf32>
    %125 = vector.broadcast %74 : vector<1x32xf32> to vector<8x32xf32>
    %126 = arith.addf %124, %125 : vector<8x32xf32>
    %127 = arith.addf %66, %126 : vector<8x32xf32>
    %c2 = arith.constant 2 : index
    %c0_48 = arith.constant 0 : index
    %c0_49 = arith.constant 0 : index
    %128 = vector.load %arg4[%c2, %c0_48, %c0_49] : memref<3x6x32xf32, #tpu.memory_space<vmem>>, vector<1x6x32xf32>
    %129 = vector.shape_cast %128 : vector<1x6x32xf32> to vector<6x32xf32>
    %130 = vector.extract_strided_slice %129 {offsets = [0, 0], sizes = [1, 32], strides = [1, 1]} : vector<6x32xf32> to vector<1x32xf32>
    %131 = vector.extract_strided_slice %129 {offsets = [1, 0], sizes = [1, 32], strides = [1, 1]} : vector<6x32xf32> to vector<1x32xf32>
    %132 = vector.extract_strided_slice %129 {offsets = [2, 0], sizes = [1, 32], strides = [1, 1]} : vector<6x32xf32> to vector<1x32xf32>
    %133 = vector.extract_strided_slice %129 {offsets = [3, 0], sizes = [1, 32], strides = [1, 1]} : vector<6x32xf32> to vector<1x32xf32>
    %134 = vector.extract_strided_slice %129 {offsets = [4, 0], sizes = [1, 32], strides = [1, 1]} : vector<6x32xf32> to vector<1x32xf32>
    %135 = vector.extract_strided_slice %129 {offsets = [5, 0], sizes = [1, 32], strides = [1, 1]} : vector<6x32xf32> to vector<1x32xf32>
    %cst_50 = arith.constant dense<0.000000e+00> : vector<8xf32>
    %136 = vector.multi_reduction <add>, %127, %cst_50 [1] : vector<8x32xf32> to vector<8xf32>
    %137 = vector.shape_cast %136 : vector<8xf32> to vector<8x1xf32>
    %cst_51 = arith.constant 3.200000e+01 : f32
    %138 = vector.broadcast %cst_51 : f32 to vector<8x1xf32>
    %139 = arith.divf %137, %138 : vector<8x1xf32>
    %140 = vector.broadcast %139 : vector<8x1xf32> to vector<8x32xf32>
    %141 = arith.subf %127, %140 : vector<8x32xf32>
    %142 = arith.mulf %141, %141 : vector<8x32xf32>
    %cst_52 = arith.constant dense<0.000000e+00> : vector<8xf32>
    %143 = vector.multi_reduction <add>, %142, %cst_52 [1] : vector<8x32xf32> to vector<8xf32>
    %144 = vector.shape_cast %143 : vector<8xf32> to vector<8x1xf32>
    %cst_53 = arith.constant 3.200000e+01 : f32
    %145 = vector.broadcast %cst_53 : f32 to vector<8x1xf32>
    %146 = arith.divf %144, %145 : vector<8x1xf32>
    %cst_54 = arith.constant 9.99999974E-6 : f32
    %147 = vector.broadcast %cst_54 : f32 to vector<8x1xf32>
    %148 = arith.addf %146, %147 : vector<8x1xf32>
    %149 = math.rsqrt %148 : vector<8x1xf32>
    %150 = vector.broadcast %149 : vector<8x1xf32> to vector<8x32xf32>
    %151 = arith.mulf %141, %150 : vector<8x32xf32>
    %152 = vector.broadcast %130 : vector<1x32xf32> to vector<8x32xf32>
    %153 = arith.mulf %151, %152 : vector<8x32xf32>
    %154 = vector.broadcast %131 : vector<1x32xf32> to vector<8x32xf32>
    %155 = arith.addf %153, %154 : vector<8x32xf32>
    %c2_55 = arith.constant 2 : index
    %c0_56 = arith.constant 0 : index
    %c0_57 = arith.constant 0 : index
    %156 = vector.load %arg5[%c2_55, %c0_56, %c0_57] : memref<3x32x32xf32, #tpu.memory_space<vmem>>, vector<1x32x32xf32>
    %157 = vector.shape_cast %156 : vector<1x32x32xf32> to vector<32x32xf32>
    %cst_58 = arith.constant dense<0.000000e+00> : vector<8x32xf32>
    %158 = tpu.matmul %155, %157, %cst_58 {dimension_numbers = #tpu.dot_dimension_numbers<[1], [0], [0], [1], [0, 0, 1, 1], [], []>} : vector<8x32xf32>, vector<32x32xf32>, vector<8x32xf32> -> vector<8x32xf32>
    %159 = vector.broadcast %132 : vector<1x32xf32> to vector<8x32xf32>
    %160 = arith.addf %158, %159 : vector<8x32xf32>
    %cst_59 = arith.constant 0.000000e+00 : f32
    %161 = vector.broadcast %cst_59 : f32 to vector<8x32xf32>
    %162 = arith.maximumf %160, %161 : vector<8x32xf32>
    %cst_60 = arith.constant dense<0.000000e+00> : vector<8xf32>
    %163 = vector.multi_reduction <add>, %162, %cst_60 [1] : vector<8x32xf32> to vector<8xf32>
    %164 = vector.shape_cast %163 : vector<8xf32> to vector<8x1xf32>
    %cst_61 = arith.constant 3.200000e+01 : f32
    %165 = vector.broadcast %cst_61 : f32 to vector<8x1xf32>
    %166 = arith.divf %164, %165 : vector<8x1xf32>
    %167 = vector.broadcast %166 : vector<8x1xf32> to vector<8x32xf32>
    %168 = arith.subf %162, %167 : vector<8x32xf32>
    %169 = arith.mulf %168, %168 : vector<8x32xf32>
    %cst_62 = arith.constant dense<0.000000e+00> : vector<8xf32>
    %170 = vector.multi_reduction <add>, %169, %cst_62 [1] : vector<8x32xf32> to vector<8xf32>
    %171 = vector.shape_cast %170 : vector<8xf32> to vector<8x1xf32>
    %cst_63 = arith.constant 3.200000e+01 : f32
    %172 = vector.broadcast %cst_63 : f32 to vector<8x1xf32>
    %173 = arith.divf %171, %172 : vector<8x1xf32>
    %cst_64 = arith.constant 9.99999974E-6 : f32
    %174 = vector.broadcast %cst_64 : f32 to vector<8x1xf32>
    %175 = arith.addf %173, %174 : vector<8x1xf32>
    %176 = math.rsqrt %175 : vector<8x1xf32>
    %177 = vector.broadcast %176 : vector<8x1xf32> to vector<8x32xf32>
    %178 = arith.mulf %168, %177 : vector<8x32xf32>
    %179 = vector.broadcast %133 : vector<1x32xf32> to vector<8x32xf32>
    %180 = arith.mulf %178, %179 : vector<8x32xf32>
    %181 = vector.broadcast %134 : vector<1x32xf32> to vector<8x32xf32>
    %182 = arith.addf %180, %181 : vector<8x32xf32>
    %c2_65 = arith.constant 2 : index
    %c0_66 = arith.constant 0 : index
    %c0_67 = arith.constant 0 : index
    %183 = vector.load %arg6[%c2_65, %c0_66, %c0_67] : memref<3x32x32xf32, #tpu.memory_space<vmem>>, vector<1x32x32xf32>
    %184 = vector.shape_cast %183 : vector<1x32x32xf32> to vector<32x32xf32>
    %cst_68 = arith.constant dense<0.000000e+00> : vector<8x32xf32>
    %185 = tpu.matmul %182, %184, %cst_68 {dimension_numbers = #tpu.dot_dimension_numbers<[1], [0], [0], [1], [0, 0, 1, 1], [], []>} : vector<8x32xf32>, vector<32x32xf32>, vector<8x32xf32> -> vector<8x32xf32>
    %186 = vector.broadcast %135 : vector<1x32xf32> to vector<8x32xf32>
    %187 = arith.addf %185, %186 : vector<8x32xf32>
    %188 = arith.addf %127, %187 : vector<8x32xf32>
    %c0_69 = arith.constant 0 : index
    %c0_70 = arith.constant 0 : index
    %189 = vector.load %arg7[%c0_69, %c0_70] : memref<2x32xf32, #tpu.memory_space<vmem>>, vector<2x32xf32>
    %190 = vector.extract_strided_slice %189 {offsets = [0, 0], sizes = [1, 32], strides = [1, 1]} : vector<2x32xf32> to vector<1x32xf32>
    %191 = vector.extract_strided_slice %189 {offsets = [1, 0], sizes = [1, 32], strides = [1, 1]} : vector<2x32xf32> to vector<1x32xf32>
    %cst_71 = arith.constant dense<0.000000e+00> : vector<8xf32>
    %192 = vector.multi_reduction <add>, %188, %cst_71 [1] : vector<8x32xf32> to vector<8xf32>
    %193 = vector.shape_cast %192 : vector<8xf32> to vector<8x1xf32>
    %cst_72 = arith.constant 3.200000e+01 : f32
    %194 = vector.broadcast %cst_72 : f32 to vector<8x1xf32>
    %195 = arith.divf %193, %194 : vector<8x1xf32>
    %196 = vector.broadcast %195 : vector<8x1xf32> to vector<8x32xf32>
    %197 = arith.subf %188, %196 : vector<8x32xf32>
    %198 = arith.mulf %197, %197 : vector<8x32xf32>
    %cst_73 = arith.constant dense<0.000000e+00> : vector<8xf32>
    %199 = vector.multi_reduction <add>, %198, %cst_73 [1] : vector<8x32xf32> to vector<8xf32>
    %200 = vector.shape_cast %199 : vector<8xf32> to vector<8x1xf32>
    %cst_74 = arith.constant 3.200000e+01 : f32
    %201 = vector.broadcast %cst_74 : f32 to vector<8x1xf32>
    %202 = arith.divf %200, %201 : vector<8x1xf32>
    %cst_75 = arith.constant 9.99999974E-6 : f32
    %203 = vector.broadcast %cst_75 : f32 to vector<8x1xf32>
    %204 = arith.addf %202, %203 : vector<8x1xf32>
    %205 = math.rsqrt %204 : vector<8x1xf32>
    %206 = vector.broadcast %205 : vector<8x1xf32> to vector<8x32xf32>
    %207 = arith.mulf %197, %206 : vector<8x32xf32>
    %208 = vector.broadcast %190 : vector<1x32xf32> to vector<8x32xf32>
    %209 = arith.mulf %207, %208 : vector<8x32xf32>
    %210 = vector.broadcast %191 : vector<1x32xf32> to vector<8x32xf32>
    %211 = arith.addf %209, %210 : vector<8x32xf32>
    %cst_76 = arith.constant 0.000000e+00 : f32
    %212 = vector.broadcast %cst_76 : f32 to vector<8x32xf32>
    %213 = arith.maximumf %211, %212 : vector<8x32xf32>
    %c0_77 = arith.constant 0 : index
    %c0_78 = arith.constant 0 : index
    %214 = vector.load %arg8[%c0_77, %c0_78] : memref<32x16xf32, #tpu.memory_space<vmem>>, vector<32x16xf32>
    %cst_79 = arith.constant dense<0.000000e+00> : vector<8x16xf32>
    %215 = tpu.matmul %213, %214, %cst_79 {dimension_numbers = #tpu.dot_dimension_numbers<[1], [0], [0], [1], [0, 0, 1, 1], [], []>} : vector<8x32xf32>, vector<32x16xf32>, vector<8x16xf32> -> vector<8x16xf32>
    %c0_80 = arith.constant 0 : index
    %c0_81 = arith.constant 0 : index
    %216 = vector.load %arg9[%c0_80, %c0_81] : memref<1x16xf32, #tpu.memory_space<vmem>>, vector<1x16xf32>
    %217 = vector.broadcast %216 : vector<1x16xf32> to vector<8x16xf32>
    %218 = arith.addf %215, %217 : vector<8x16xf32>
    %c0_82 = arith.constant 0 : index
    %c0_83 = arith.constant 0 : index
    %219 = vector.load %arg10[%c0_82, %c0_83] : memref<8x16xf32, #tpu.memory_space<vmem>>, vector<8x16xf32>
    tpu.vector_store %arg10[%c0_82, %c0_83], %218 {strides = array<i32>} : memref<8x16xf32, #tpu.memory_space<vmem>>, vector<8x16xf32>,
    return
  }
  func.func @transform_0(%arg0: i32) -> (i32, i32) {
    %c0_i32 = arith.constant 0 : i32
    %c0_i32_0 = arith.constant 0 : i32
    return %arg0, %c0_i32 : i32, i32
  }
  func.func @transform_1(%arg0: i32) -> (i32, i32) {
    %c0_i32 = arith.constant 0 : i32
    %c0_i32_0 = arith.constant 0 : i32
    %c0_i32_1 = arith.constant 0 : i32
    return %c0_i32, %c0_i32_0 : i32, i32
  }
  func.func @transform_2(%arg0: i32) -> (i32, i32) {
    %c0_i32 = arith.constant 0 : i32
    %c0_i32_0 = arith.constant 0 : i32
    %c0_i32_1 = arith.constant 0 : i32
    return %c0_i32, %c0_i32_0 : i32, i32
  }
  func.func @transform_3(%arg0: i32) -> (i32, i32, i32) {
    %c0_i32 = arith.constant 0 : i32
    %c0_i32_0 = arith.constant 0 : i32
    %c0_i32_1 = arith.constant 0 : i32
    %c0_i32_2 = arith.constant 0 : i32
    return %c0_i32, %c0_i32_0, %c0_i32_1 : i32, i32, i32
  }
  func.func @transform_4(%arg0: i32) -> (i32, i32, i32) {
    %c0_i32 = arith.constant 0 : i32
    %c0_i32_0 = arith.constant 0 : i32
    %c0_i32_1 = arith.constant 0 : i32
    %c0_i32_2 = arith.constant 0 : i32
    return %c0_i32, %c0_i32_0, %c0_i32_1 : i32, i32, i32
  }
  func.func @transform_5(%arg0: i32) -> (i32, i32, i32) {
    %c0_i32 = arith.constant 0 : i32
    %c0_i32_0 = arith.constant 0 : i32
    %c0_i32_1 = arith.constant 0 : i32
    %c0_i32_2 = arith.constant 0 : i32
    return %c0_i32, %c0_i32_0, %c0_i32_1 : i32, i32, i32
  }
  func.func @transform_6(%arg0: i32) -> (i32, i32) {
    %c0_i32 = arith.constant 0 : i32
    %c0_i32_0 = arith.constant 0 : i32
    %c0_i32_1 = arith.constant 0 : i32
    return %c0_i32, %c0_i32_0 : i32, i32
  }
  func.func @transform_7(%arg0: i32) -> (i32, i32) {
    %c0_i32 = arith.constant 0 : i32
    %c0_i32_0 = arith.constant 0 : i32
    %c0_i32_1 = arith.constant 0 : i32
    return %c0_i32, %c0_i32_0 : i32, i32
  }
  func.func @transform_8(%arg0: i32) -> (i32, i32) {
    %c0_i32 = arith.constant 0 : i32
    %c0_i32_0 = arith.constant 0 : i32
    %c0_i32_1 = arith.constant 0 : i32
    return %c0_i32, %c0_i32_0 : i32, i32
  }
  func.func @transform_9(%arg0: i32) -> (i32, i32) {
    %c0_i32 = arith.constant 0 : i32
    %c0_i32_0 = arith.constant 0 : i32
    return %arg0, %c0_i32 : i32, i32
  }
}

</mosaic_0001>

<bundles_post_ra>
// kernel: prime_factor_mlp.1
= control target key start
LH: loop header
LB: loop body
LE: loop exit
PB: predicated region body
PF: predicated region fallthrough
CT: control target
= control target key end

     0   :  { %14 = vsyncpa [#allocation3], 0  ;;  %s1373_s0 = inlined_call_operand.vmem [shape: f32[8,16], index: 0, kind: input, shape index: {}]   ;;  %s1374_s1 = inlined_call_operand.vmem [shape: f32[16,32], index: 1, kind: input, shape index: {}]   ;;  %s1375_s2 = inlined_call_operand.vmem [shape: f32[1,32], index: 2, kind: input, shape index: {}]   ;;  %s1376_s3 = inlined_call_operand.vmem [shape: f32[3,6,32], index: 3, kind: input, shape index: {}]   ;;  %s1377_s4 = inlined_call_operand.hbm [shape: f32[3,32,32], index: 4, kind: input, shape index: {}]   ;;  %s1378_s5 = inlined_call_operand.hbm [shape: f32[3,32,32], index: 5, kind: input, shape index: {}]   ;;  %s1379_s6 = inlined_call_operand.vmem [shape: f32[2,32], index: 6, kind: input, shape index: {}]   ;;  %s1380_s7 = inlined_call_operand.vmem [shape: f32[32,16], index: 7, kind: input, shape index: {}]   ;;  %s1381_s8 = inlined_call_operand.vmem [shape: f32[1,16], index: 8, kind: input, shape index: {}]   ;;  %s1382_s9 = inlined_call_operand.vmem [shape: f32[8,16], index: 9, kind: output, shape index: {}]  }
   0x1   :  { %15 = vsyncpa [#allocation5], 0  ;;  %s1149_s30 = smov [#allocation2]   ;;  %s1101_s13 = scalar_lea.hbm %s1377_s4, 1536 }
   0x2   :  { %s29_s10 = sshll.u32 %s1149_s30, 4  ;;  %p1102_p0 = scmp.ne.s32.totalorder %s1377_s4, %s1101_s13  ;;  %s30_s10 = int_to_ptr.vmem [resolvable:$true] %s29_s10 }
   0x3   :  { %p1105_p1 = scmp.lt.u32.totalorder %s1101_s13, %s1377_s4 }
   0x5   :  { %p1107_p2 = pnand %p1105_p1, %p1102_p0 }
   0x7   :  { %1110 = shalt.err (!%p1107_p2)
}
   0x8   :  { %s1111_s18 = scalar_lea.vmem %s30_s10, 1536  ;;  %p1116_p4 = scmp.lt.s32.totalorder %s30_s10, %s30_s10 }
   0x9   :  { %p1112_p3 = scmp.ne.s32.totalorder %s30_s10, %s1111_s18  ;;  %p1117_p5 = scmp.lt.s32.totalorder %s1111_s18, %s1111_s18 }
   0xb   :  { %p1118_p6 = por %p1117_p5, %p1116_p4 }
   0xd   :  { %p1119_p7 = pnand %p1118_p6, %p1112_p3 }
   0xf   :  { %1122 = shalt.err (!%p1119_p7)
}
  0x10   :  { %s1150_s19 = smov 128   ;;  %s1151_s20 = smov 8  }
  0x11   :  { %35 = dma.hbm_to_vmem [thread:$0]  %s1377_s4, 1536, %s30_s10, [#allocation3], %s1150_s19, %s1150_s19, %s1151_s20  }
  0x12   :  { %s1152_s23 = smov [#allocation4]   ;;  %s1123_s27 = scalar_lea.hbm %s1378_s5, 1536 }
  0x13   :  { %s41_s24 = sshll.u32 %s1152_s23, 4  ;;  %p1124_p8 = scmp.ne.s32.totalorder %s1378_s5, %s1123_s27  ;;  %s42_s24 = int_to_ptr.vmem [resolvable:$true] %s41_s24 }
  0x14   :  { %p1127_p9 = scmp.lt.u32.totalorder %s1123_s27, %s1378_s5 }
  0x16   :  { %p1129_p10 = pnand %p1127_p9, %p1124_p8 }
  0x18   :  { %1132 = shalt.err (!%p1129_p10)
}
  0x19   :  { %s1133_s12 = scalar_lea.vmem %s42_s24, 1536  ;;  %p1138_p12 = scmp.lt.s32.totalorder %s42_s24, %s42_s24 }
  0x1a   :  { %p1134_p11 = scmp.ne.s32.totalorder %s42_s24, %s1133_s12  ;;  %p1139_p13 = scmp.lt.s32.totalorder %s1133_s12, %s1133_s12 }
  0x1c   :  { %p1140_p0 = por %p1139_p13, %p1138_p12 }
  0x1e   :  { %p1141_p1 = pnand %p1140_p0, %p1134_p11 }
  0x20   :  { %1144 = shalt.err (!%p1141_p1)
}
  0x21   :  { %47 = dma.hbm_to_vmem [thread:$0]  %s1378_s5, 1536, %s42_s24, [#allocation5], %s1150_s19, %s1150_s19, %s1151_s20  }
  0x22   :  { %1145 = dma.done.wait [#allocation3], 1536  }
  0x23   :  { %1146 = vsyncadd [#allocation3], 4294965760 }
  0x24   :  { %1147 = dma.done.wait [#allocation5], 1536  }
  0x25   :  { %1148 = vsyncadd [#allocation5], 4294965760  ;;  %v1153_v0 = vmov 0.0|0.0   ;;  %vm1154_vm0 = vmmov 0   ;;  %v1155_v1 = vmov 0.0   ;;  %v61_v2 = vld [vmem:[%s1374_s1] sm:$0xff]  ;;  %v160_v24 = vlaneseq }
  0x26   :  { %1035 = vmatprep.subr.bf16.mxu0 %v1153_v0  ;;  %955 = vmatprep.mubr.msk.f32.mxu0 %vm1154_vm0, %v1155_v1  ;;  %v62_v3 = vld [vmem:[%s1374_s1 + $0x8] sm:$0xff]  ;;  %v60_v5 = vld [vmem:[%s1373_s0] sm:$0xff]  ;;  %vm70_vm1 = vcmask 130048   ;;  %vm145_vm2 = vcmask 261120   ;;  %v172_v18 = vld [vmem:[#allocation2 + $0x10] sm:$0xff] }
  0x27   :  { %1038 = vmatprep.subr.bf16.mxu1 %v1153_v0  ;;  %966 = vmatprep.mubr.msk.f32.mxu1 %vm1154_vm0, %v1155_v1  ;;  %v1036_v4 = vpack.c.bf16 %v62_v3, %v61_v2  ;;  %v901_v6 = vld [vmem:[%s1375_s2] ss:$0 sm:$0xff]  ;;  %v171_v17 = vld [vmem:[#allocation2 + $0x8] sm:$0xff]  ;;  %v173_v20 = vld [vmem:[#allocation2 + $0x18] sm:$0xff]  ;;  %v161_v26 = vshrl.u32 %v160_v24, 7 }
  0x28   :  { %v170_v16 = vld [vmem:[#allocation2] sm:$0xff]  ;;  %v1042_v21 = vpack.c.bf16 %v173_v20, %v172_v18  ;;  %v276_v49 = vld [vmem:[#allocation4 + $0x8] sm:$0xff]  ;;  %v277_v51 = vld [vmem:[#allocation4 + $0x10] sm:$0xff] }
  0x29   :  { %1037 = vmatpush3.bf16.msra.mxu0 %v1036_v4  ;;  %v1039_v19 = vpack.c.bf16 %v171_v17, %v170_v16  ;;  %v1260_v27 = vsub.s32 0, %v161_v26  ;;  %v144_v28 = vld [vmem:[%s1376_s3] sm:$0x3f]  ;;  %v1265_v29 = vsub.s32 1, %v161_v26  ;;  %v1272_v36 = vsub.s32 2, %v161_v26  ;;  %v278_v52 = vld [vmem:[#allocation4 + $0x18] sm:$0xff] }
  0x2a   :  { %1044 = vmatprep.subr.bf16.mxu0 %v1153_v0  ;;  %v275_v48 = vld [vmem:[#allocation4] sm:$0xff]  ;;  %v1048_v53 = vpack.c.bf16 %v278_v52, %v277_v51  ;;  %v1279_v57 = vsub.s32 3, %v161_v26  ;;  %v1281_v58 = vsub.s32 4, %v161_v26  ;;  %v1288_v3 = vsub.s32 5, %v161_v26  ;;  %v384_v17 = vld [vmem:[#allocation2 + $0x28] sm:$0xff] }
  0x2b   :  { %1040 = vmatpush3.bf16.msra.mxu1 %v1039_v19  ;;  %v163_v30 = vrot.slane %v144_v28, %v1260_v27  ;;  %v168_v33 = vrot.slane %v144_v28, %v1265_v29  ;;  %v177_v37 = vrot.slane %v144_v28, %v1272_v36  ;;  %v1045_v50 = vpack.c.bf16 %v276_v49, %v275_v48  ;;  %v383_v16 = vld [vmem:[#allocation2 + $0x20] sm:$0xff]  ;;  %v386_v19 = vld [vmem:[#allocation2 + $0x38] sm:$0xff]  ;;  %v905_v24 = vld [vmem:[%s1376_s3 + $0x8] sm:$0x3f] }
  0x2c   :  { %956 = vmatmul.mubr.msk.f32.vlgmr.msra.gmra.mrb[0].mxu0 %vm70_vm1, %v60_v5  ;;  %1041 = vmatprep.subr.bf16.mxu1 %v1153_v0  ;;  %v268_v59 = vrot.slane %v144_v28, %v1279_v57  ;;  %v273_v62 = vrot.slane %v144_v28, %v1281_v58  ;;  %v282_v4 = vrot.slane %v144_v28, %v1288_v3  ;;  %v491_v48 = vld [vmem:[#allocation4 + $0x30] sm:$0xff]  ;;  %v492_v49 = vld [vmem:[#allocation4 + $0x38] sm:$0xff] }
  0x2d   :  { %977 = vmatprep.mubr.msk.f32.mxu0 %vm1154_vm0, %v1155_v1  ;;  %1046 = vmatpush3.bf16.msra.mxu0 %v1045_v50  ;;  %v1051_v18 = vpack.c.bf16 %v384_v17, %v383_v16  ;;  %v1060_v50 = vpack.c.bf16 %v492_v49, %v491_v48  ;;  %v600_v17 = vld [vmem:[#allocation2 + $0x58] sm:$0xff] }
  0x2e   :  { %1047 = vmatprep.subr.bf16.mxu0 %v1153_v0 }
  0x2f   :  { %1043 = vmatpush3.bf16.msra.mxu1 %v1042_v21 }
  0x30   :  { %1050 = vmatprep.subr.bf16.mxu1 %v1153_v0 }
  0x31   :  { %1049 = vmatpush3.bf16.msra.mxu0 %v1048_v53 }
  0x32   :  { %1056 = vmatprep.subr.bf16.mxu0 %v1153_v0 }
  0xff   :  { %v140_v7 = vpop.f32.mrb[0].mxu0 }
 0x100   :  { %v1252_v8 = vadd.f32 %v901_v6, %v140_v7  ;;  %v957_v9 = vpop.f32.mrb[1].mxu0 }
 0x102   :  { %v146_v10 = vsel %vm145_vm2, %v1252_v8, 0.0 }
 0x103   :  { %147 = vadd.xlane.f32.xlu0 %v146_v10 }
 0x190   :  { %v148_v11 = vpop.xlane.xlu0 %147 }
 0x191   :  { %v150_v12 = vmul.f32 0.03125, %v148_v11 }
 0x193   :  { %v151_v13 = vsub.f32 %v1252_v8, %v150_v12 }
 0x195   :  { %v152_v14 = vmul.f32 %v151_v13, %v151_v13 }
 0x197   :  { %v153_v15 = vsel %vm145_vm2, %v152_v14, 0.0 }
 0x198   :  { %154 = vadd.xlane.f32.xlu0 %v153_v15 }
 0x225   :  { %v155_v22 = vpop.xlane.xlu0 %154 }
 0x226   :  { %v156_v23 = vmul.f32 0.03125, %v155_v22 }
 0x228   :  { %v157_v25 = vadd.f32 1e-05, %v156_v23 }
 0x22a   :  { %1087 = vrsqrt.f32 %v157_v25  ;;  %v375_v25 = vrot.slane %v905_v24, %v1260_v27 }
 0x234   :  { %v1088_v31 = vpop.eup %1087 }
 0x235   :  { %v159_v32 = vmul.f32 %v1088_v31, %v151_v13 }
 0x237   :  { %v164_v34 = vmul.f32 %v163_v30, %v159_v32  ;;  %v380_v30 = vrot.slane %v905_v24, %v1265_v29 }
 0x239   :  { %v169_v35 = vadd.f32 %v168_v33, %v164_v34  ;;  %v390_v33 = vrot.slane %v905_v24, %v1272_v36 }
 0x23b   :  { %967 = vmatmul.mubr.msk.f32.vlgmr.msra.gmra.mrb[0].mxu1 %vm145_vm2, %v169_v35 }
 0x23c   :  { %988 = vmatprep.mubr.msk.f32.mxu1 %vm1154_vm0, %v1155_v1  ;;  %1052 = vmatpush3.bf16.msra.mxu1 %v1051_v18 }
 0x23d   :  { %1053 = vmatprep.subr.bf16.mxu1 %v1153_v0 }
 0x30e   :  { %v247_v38 = vpop.f32.mrb[0].mxu1 }
 0x30f   :  { %v248_v39 = vadd.f32 %v247_v38, %v177_v37  ;;  %v968_v40 = vpop.f32.mrb[1].mxu1 }
 0x311   :  { %v251_v41 = vmax.f32 %v248_v39, 0.0 }
 0x313   :  { %v252_v42 = vsel %vm145_vm2, %v251_v41, 0.0 }
 0x314   :  { %253 = vadd.xlane.f32.xlu1 %v252_v42 }
 0x3a1   :  { %v254_v43 = vpop.xlane.xlu1 %253 }
 0x3a2   :  { %v255_v44 = vmul.f32 0.03125, %v254_v43 }
 0x3a4   :  { %v256_v45 = vsub.f32 %v251_v41, %v255_v44 }
 0x3a6   :  { %v257_v46 = vmul.f32 %v256_v45, %v256_v45 }
 0x3a8   :  { %v258_v47 = vsel %vm145_vm2, %v257_v46, 0.0  ;;  %v490_v46 = vld [vmem:[#allocation4 + $0x28] sm:$0xff] }
 0x3a9   :  { %259 = vadd.xlane.f32.xlu1 %v258_v47 }
 0x436   :  { %v260_v54 = vpop.xlane.xlu1 %259 }
 0x437   :  { %v261_v55 = vmul.f32 0.03125, %v260_v54  ;;  %v481_v54 = vrot.slane %v905_v24, %v1279_v57 }
 0x439   :  { %v262_v56 = vadd.f32 1e-05, %v261_v55 }
 0x43b   :  { %1089 = vrsqrt.f32 %v262_v56 }
 0x445   :  { %v1090_v60 = vpop.eup %1089 }
 0x446   :  { %v264_v61 = vmul.f32 %v1090_v60, %v256_v45  ;;  %v489_v45 = vld [vmem:[#allocation4 + $0x20] sm:$0xff] }
 0x447   :  { %v1057_v47 = vpack.c.bf16 %v490_v46, %v489_v45 }
 0x448   :  { %v269_v63 = vmul.f32 %v268_v59, %v264_v61  ;;  %v486_v59 = vrot.slane %v905_v24, %v1281_v58 }
 0x44a   :  { %v274_v2 = vadd.f32 %v273_v62, %v269_v63  ;;  %v496_v62 = vrot.slane %v905_v24, %v1288_v3 }
 0x44c   :  { %978 = vmatmul.mubr.msk.f32.vlgmr.msra.gmra.mrb[2].mxu0 %vm145_vm2, %v274_v2 }
 0x44d   :  { %999 = vmatprep.mubr.msk.f32.mxu0 %vm1154_vm0, %v1155_v1  ;;  %1058 = vmatpush3.bf16.msra.mxu0 %v1057_v47 }
 0x44e   :  { %1059 = vmatprep.subr.bf16.mxu0 %v1153_v0 }
 0x451   :  { %1061 = vmatpush3.bf16.msra.mxu0 %v1060_v50 }
 0x452   :  { %1068 = vmatprep.subr.bf16.mxu0 %v1153_v0 }
 0x51f   :  { %v352_v5 = vpop.f32.mrb[2].mxu0 }
 0x520   :  { %v353_v6 = vadd.f32 %v352_v5, %v282_v4  ;;  %v979_v7 = vpop.f32.mrb[3].mxu0 }
 0x522   :  { %v1292_v9 = vadd.f32 %v353_v6, %v1252_v8  ;;  %v385_v8 = vld [vmem:[#allocation2 + $0x30] sm:$0xff] }
 0x523   :  { %v1054_v20 = vpack.c.bf16 %v386_v19, %v385_v8 }
 0x524   :  { %v359_v10 = vsel %vm145_vm2, %v1292_v9, 0.0 }
 0x525   :  { %360 = vadd.xlane.f32.xlu0 %v359_v10  ;;  %1055 = vmatpush3.bf16.msra.mxu1 %v1054_v20 }
 0x526   :  { %1062 = vmatprep.subr.bf16.mxu1 %v1153_v0 }
 0x5b2   :  { %v361_v11 = vpop.xlane.xlu0 %360 }
 0x5b3   :  { %v362_v12 = vmul.f32 0.03125, %v361_v11 }
 0x5b5   :  { %v363_v13 = vsub.f32 %v1292_v9, %v362_v12 }
 0x5b7   :  { %v364_v14 = vmul.f32 %v363_v13, %v363_v13 }
 0x5b9   :  { %v365_v15 = vsel %vm145_vm2, %v364_v14, 0.0  ;;  %v597_v14 = vld [vmem:[#allocation2 + $0x40] sm:$0xff] }
 0x5ba   :  { %366 = vadd.xlane.f32.xlu1 %v365_v15  ;;  %v598_v15 = vld [vmem:[#allocation2 + $0x48] sm:$0xff] }
 0x5bb   :  { %v1063_v16 = vpack.c.bf16 %v598_v15, %v597_v14  ;;  %v785_v15 = vld [vmem:[%s1379_s6] sm:$0x3] }
 0x647   :  { %v367_v21 = vpop.xlane.xlu1 %366 }
 0x648   :  { %v368_v22 = vmul.f32 0.03125, %v367_v21  ;;  %v908_v21 = vld [vmem:[%s1376_s3 + $0x10] sm:$0x3f] }
 0x649   :  { %v695_v49 = vrot.slane %v908_v21, %v1279_v57 }
 0x64a   :  { %v369_v23 = vadd.f32 1e-05, %v368_v22  ;;  %v589_v22 = vrot.slane %v908_v21, %v1260_v27 }
 0x64c   :  { %1091 = vrsqrt.f32 %v369_v23 }
 0x656   :  { %v1092_v26 = vpop.eup %1091 }
 0x657   :  { %v371_v28 = vmul.f32 %v1092_v26, %v363_v13 }
 0x659   :  { %v376_v31 = vmul.f32 %v375_v25, %v371_v28  ;;  %v594_v25 = vrot.slane %v908_v21, %v1265_v29 }
 0x65b   :  { %v381_v32 = vadd.f32 %v380_v30, %v376_v31  ;;  %v604_v30 = vrot.slane %v908_v21, %v1272_v36  ;;  %v706_v36 = vld [vmem:[#allocation4 + $0x58] sm:$0xff] }
 0x65d   :  { %989 = vmatmul.mubr.msk.f32.vlgmr.msra.gmra.mrb[2].mxu1 %vm145_vm2, %v381_v32 }
 0x65e   :  { %1010 = vmatprep.mubr.msk.f32.mxu1 %vm1154_vm0, %v1155_v1  ;;  %1064 = vmatpush3.bf16.msra.mxu1 %v1063_v16 }
 0x65f   :  { %1065 = vmatprep.subr.bf16.mxu1 %v1153_v0 }
 0x730   :  { %v460_v34 = vpop.f32.mrb[2].mxu1 }
 0x731   :  { %v461_v35 = vadd.f32 %v460_v34, %v390_v33  ;;  %v990_v37 = vpop.f32.mrb[3].mxu1 }
 0x733   :  { %v464_v38 = vmax.f32 %v461_v35, 0.0 }
 0x735   :  { %v465_v39 = vsel %vm145_vm2, %v464_v38, 0.0 }
 0x736   :  { %466 = vadd.xlane.f32.xlu0 %v465_v39 }
 0x7c3   :  { %v467_v40 = vpop.xlane.xlu0 %466 }
 0x7c4   :  { %v468_v41 = vmul.f32 0.03125, %v467_v40 }
 0x7c6   :  { %v469_v42 = vsub.f32 %v464_v38, %v468_v41 }
 0x7c8   :  { %v470_v43 = vmul.f32 %v469_v42, %v469_v42 }
 0x7ca   :  { %v471_v44 = vsel %vm145_vm2, %v470_v43, 0.0  ;;  %v704_v43 = vld [vmem:[#allocation4 + $0x48] sm:$0xff] }
 0x7cb   :  { %472 = vadd.xlane.f32.xlu1 %v471_v44 }
 0x858   :  { %v473_v51 = vpop.xlane.xlu1 %472 }
 0x859   :  { %v474_v52 = vmul.f32 0.03125, %v473_v51 }
 0x85b   :  { %v475_v53 = vadd.f32 1e-05, %v474_v52  ;;  %v700_v52 = vrot.slane %v908_v21, %v1281_v58 }
 0x85d   :  { %1093 = vrsqrt.f32 %v475_v53 }
 0x867   :  { %v1094_v55 = vpop.eup %1093 }
 0x868   :  { %v477_v56 = vmul.f32 %v1094_v55, %v469_v42  ;;  %v703_v42 = vld [vmem:[#allocation4 + $0x40] sm:$0xff]  ;;  %v710_v55 = vrot.slane %v908_v21, %v1288_v3  ;;  %v811_v3 = vld [vmem:[%s1380_s7 + $0x8] sm:$0xff] }
 0x869   :  { %v1069_v44 = vpack.c.bf16 %v704_v43, %v703_v42 }
 0x86a   :  { %v482_v60 = vmul.f32 %v481_v54, %v477_v56 }
 0x86c   :  { %v487_v61 = vadd.f32 %v486_v59, %v482_v60 }
 0x86e   :  { %1000 = vmatmul.mubr.msk.f32.vlgmr.msra.gmra.mrb[4].mxu0 %vm145_vm2, %v487_v61 }
 0x86f   :  { %1021 = vmatprep.mubr.msk.f32.mxu0 %vm1154_vm0, %v1155_v1  ;;  %1070 = vmatpush3.bf16.msra.mxu0 %v1069_v44 }
 0x870   :  { %1071 = vmatprep.subr.bf16.mxu0 %v1153_v0 }
 0x941   :  { %v566_v63 = vpop.f32.mrb[4].mxu0 }
 0x942   :  { %v567_v2 = vadd.f32 %v566_v63, %v496_v62  ;;  %v1001_v4 = vpop.f32.mrb[5].mxu0 }
 0x944   :  { %v1320_v5 = vadd.f32 %v567_v2, %v1292_v9  ;;  %v599_v9 = vld [vmem:[#allocation2 + $0x50] sm:$0xff] }
 0x945   :  { %v1066_v18 = vpack.c.bf16 %v600_v17, %v599_v9  ;;  %v807_v17 = vrot.slane %v785_v15, %v1265_v29 }
 0x946   :  { %v573_v6 = vsel %vm145_vm2, %v1320_v5, 0.0 }
 0x947   :  { %574 = vadd.xlane.f32.xlu0 %v573_v6  ;;  %1067 = vmatpush3.bf16.msra.mxu1 %v1066_v18  ;;  %v810_v6 = vld [vmem:[%s1380_s7] sm:$0xff] }
 0x948   :  { %1074 = vmatprep.subr.bf16.mxu1 %v1153_v0 }
 0x9d4   :  { %v575_v7 = vpop.xlane.xlu0 %574 }
 0x9d5   :  { %v576_v10 = vmul.f32 0.03125, %v575_v7  ;;  %v1075_v7 = vpack.c.bf16 %v811_v3, %v810_v6 }
 0x9d7   :  { %v577_v11 = vsub.f32 %v1320_v5, %v576_v10  ;;  %v813_v10 = vld [vmem:[%s1380_s7 + $0x18] sm:$0xff] }
 0x9d9   :  { %v578_v12 = vmul.f32 %v577_v11, %v577_v11 }
 0x9db   :  { %v579_v13 = vsel %vm145_vm2, %v578_v12, 0.0 }
 0x9dc   :  { %580 = vadd.xlane.f32.xlu1 %v579_v13 }
 0xa69   :  { %v581_v8 = vpop.xlane.xlu1 %580 }
 0xa6a   :  { %v582_v19 = vmul.f32 0.03125, %v581_v8 }
 0xa6c   :  { %v583_v20 = vadd.f32 1e-05, %v582_v19 }
 0xa6e   :  { %1095 = vrsqrt.f32 %v583_v20  ;;  %v911_v20 = vld [vmem:[%s1381_s8] ss:$0 sm:$0xff] }
 0xa78   :  { %v1096_v23 = vpop.eup %1095 }
 0xa79   :  { %v585_v24 = vmul.f32 %v1096_v23, %v577_v11 }
 0xa7b   :  { %v590_v26 = vmul.f32 %v589_v22, %v585_v24 }
 0xa7d   :  { %v595_v28 = vadd.f32 %v594_v25, %v590_v26 }
 0xa7f   :  { %1011 = vmatmul.mubr.msk.f32.vlgmr.msra.gmra.mrb[4].mxu1 %vm145_vm2, %v595_v28 }
 0xa80   :  { %1032 = vmatprep.mubr.msk.f32.mxu1 %vm1154_vm0, %v1155_v1  ;;  %v705_v1 = vld [vmem:[#allocation4 + $0x50] sm:$0xff]  ;;  %1076 = vmatpush3.bf16.msra.mxu1 %v1075_v7 }
 0xa81   :  { %v1072_v45 = vpack.c.bf16 %v706_v36, %v705_v1  ;;  %1077 = vmatprep.subr.bf16.mxu1 %v1153_v0  ;;  %v802_v0 = vrot.slane %v785_v15, %v1260_v27 }
 0xa83   :  { %1073 = vmatpush3.bf16.msra.mxu0 %v1072_v45 }
 0xb52   :  { %v674_v31 = vpop.f32.mrb[4].mxu1 }
 0xb53   :  { %v675_v32 = vadd.f32 %v674_v31, %v604_v30  ;;  %v1012_v33 = vpop.f32.mrb[5].mxu1 }
 0xb55   :  { %v678_v34 = vmax.f32 %v675_v32, 0.0 }
 0xb57   :  { %v679_v35 = vsel %vm145_vm2, %v678_v34, 0.0 }
 0xb58   :  { %680 = vadd.xlane.f32.xlu0 %v679_v35 }
 0xbe5   :  { %v681_v37 = vpop.xlane.xlu0 %680 }
 0xbe6   :  { %v682_v38 = vmul.f32 0.03125, %v681_v37 }
 0xbe8   :  { %v683_v39 = vsub.f32 %v678_v34, %v682_v38 }
 0xbea   :  { %v684_v40 = vmul.f32 %v683_v39, %v683_v39 }
 0xbec   :  { %v685_v41 = vsel %vm145_vm2, %v684_v40, 0.0 }
 0xbed   :  { %686 = vadd.xlane.f32.xlu1 %v685_v41 }
 0xc7a   :  { %v687_v46 = vpop.xlane.xlu1 %686 }
 0xc7b   :  { %v688_v47 = vmul.f32 0.03125, %v687_v46 }
 0xc7d   :  { %v689_v48 = vadd.f32 1e-05, %v688_v47 }
 0xc7f   :  { %1097 = vrsqrt.f32 %v689_v48 }
 0xc89   :  { %v1098_v50 = vpop.eup %1097 }
 0xc8a   :  { %v691_v51 = vmul.f32 %v1098_v50, %v683_v39 }
 0xc8c   :  { %v696_v53 = vmul.f32 %v695_v49, %v691_v51 }
 0xc8e   :  { %v701_v54 = vadd.f32 %v700_v52, %v696_v53 }
 0xc90   :  { %1022 = vmatmul.mubr.msk.f32.vlgmr.msra.gmra.mrb[6].mxu0 %vm145_vm2, %v701_v54 }
 0xd63   :  { %v780_v56 = vpop.f32.mrb[6].mxu0 }
 0xd64   :  { %v781_v59 = vadd.f32 %v780_v56, %v710_v55  ;;  %v1023_v60 = vpop.f32.mrb[7].mxu0 }
 0xd66   :  { %v784_v61 = vadd.f32 %v781_v59, %v1320_v5  ;;  %v812_v5 = vld [vmem:[%s1380_s7 + $0x10] sm:$0xff] }
 0xd67   :  { %v1078_v11 = vpack.c.bf16 %v813_v10, %v812_v5 }
 0xd68   :  { %v786_v62 = vsel %vm145_vm2, %v784_v61, 0.0 }
 0xd69   :  { %787 = vadd.xlane.f32.xlu0 %v786_v62  ;;  %1079 = vmatpush3.bf16.msra.mxu1 %v1078_v11 }
 0xdf6   :  { %v788_v63 = vpop.xlane.xlu0 %787 }
 0xdf7   :  { %v789_v57 = vmul.f32 0.03125, %v788_v63 }
 0xdf9   :  { %v790_v2 = vsub.f32 %v784_v61, %v789_v57 }
 0xdfb   :  { %v791_v4 = vmul.f32 %v790_v2, %v790_v2 }
 0xdfd   :  { %v792_v58 = vsel %vm145_vm2, %v791_v4, 0.0 }
 0xdfe   :  { %793 = vadd.xlane.f32.xlu1 %v792_v58 }
 0xe8b   :  { %v794_v12 = vpop.xlane.xlu1 %793 }
 0xe8c   :  { %v795_v13 = vmul.f32 0.03125, %v794_v12 }
 0xe8e   :  { %v796_v14 = vadd.f32 1e-05, %v795_v13 }
 0xe90   :  { %1099 = vrsqrt.f32 %v796_v14 }
 0xe9a   :  { %v1100_v16 = vpop.eup %1099 }
 0xe9b   :  { %v798_v9 = vmul.f32 %v1100_v16, %v790_v2 }
 0xe9d   :  { %v803_v18 = vmul.f32 %v802_v0, %v798_v9 }
 0xe9f   :  { %v808_v8 = vadd.f32 %v807_v17, %v803_v18 }
 0xea1   :  { %v809_v19 = vmax.f32 %v808_v8, 0.0 }
 0xea3   :  { %1033 = vmatmul.mubr.msk.f32.vlgmr.msra.gmra.mrb[6].mxu1 %vm145_vm2, %v809_v19 }
 0xf76   :  { %v890_v21 = vpop.f32.mrb[6].mxu1 }
 0xf77   :  { %v891_v22 = vadd.f32 %v911_v20, %v890_v21  ;;  %v1034_v23 = vpop.f32.mrb[7].mxu1 }
 0xf79   :  { %894 = vst.msk [vmem:[%s1382_s9] sm:$0xff] %vm70_vm1, %v891_v22 }
 0xf7a   :  { %899 = vsyncpa [#allocation3], 1 }
 0xf7b   :  { %900 = vsyncpa [#allocation5], 1 }

</bundles_post_ra>
